<compile_context>
chip_gen: v6e
topology: v6e:2x2x1
jax: 0.10.0
libtpu: 0.0.40
codegen_flags: <defaults>
</compile_context>

<pallas_src>
import jax
import jax.numpy as jnp
from jax.experimental import pallas as pl
from jax.experimental.pallas import tpu as pltpu


def late_fusion_kernel(
    text_ref,   # [TB, E]     mean-pooled text (compute dtype)
    img_ref,    # [TB, CHW]   flattened image pixels (compute dtype)
    wt_ref,     # [E, Td]     text backbone projection
    wi_ref,     # [CHW, Id]   image backbone projection
    wct_ref,    # [Td, Op]    classifier weight, text half (Op = lane-padded out dim)
    wci_ref,    # [Id, Op]    classifier weight, image half
    bt_ref,     # [1, Op]     fully folded bias (f32)
    out_ref,    # [TB, Op]    f32 logits
):
    # ---- synthetic text backbone: Linear (bias folded into bt_ref) ----
    text_h = jnp.dot(text_ref[...], wt_ref[...],
                     preferred_element_type=jnp.float32)              # [TB, Td]

    # ---- synthetic image backbone: Linear over flattened pixels ----
    img_h = jnp.dot(img_ref[...], wi_ref[...],
                    preferred_element_type=jnp.float32)               # [TB, Id]

    # ---- late fusion classifier: Dropout (eval identity) + Linear ----
    # concat([text, image], 1) @ Wc  ==  text @ Wc[:Td] + image @ Wc[Td:]
    logits = (
        jnp.dot(text_h.astype(wct_ref.dtype), wct_ref[...],
                preferred_element_type=jnp.float32)
        + jnp.dot(img_h.astype(wci_ref.dtype), wci_ref[...],
                  preferred_element_type=jnp.float32)
        + bt_ref[...]
    )                                                                  # [TB, Op]
    out_ref[...] = logits


def late_fusion_forward(text_input, image_input, p, *, tb=256, out_pad=128,
                        compute_dtype=jnp.bfloat16):
    B, S, E = text_input.shape

    # Text backbone front-end: mean-pool over seq in the wrapper (cheap fused
    # XLA reduce); avoids inflating the kernel's text K dim / weight bytes by S.
    text_mean = jnp.mean(text_input, axis=1)            # [B, E]
    img_flat = image_input.reshape(B, -1)               # NCHW -> [B, C*H*W]
    chw = img_flat.shape[1]

    text_dim = p["wt"].shape[1]
    out_dim = p["wc"].shape[1]

    # Lane-pad the classifier to 128 output lanes and split text/image halves.
    wc_pad = jnp.pad(p["wc"], ((0, 0), (0, out_pad - out_dim)))  # [Td+Id, Op]
    wct = wc_pad[:text_dim]                                      # [Td, Op]
    wci = wc_pad[text_dim:]                                      # [Id, Op]

    # Fold all biases (exact in eval mode, linear backbones):
    #   (x@wt+bt)@Wct + (y@wi+bi)@Wci + bc = x@wt@Wct + y@wi@Wci + b_total
    b_total = (
        p["bt"] @ wct + p["bi"] @ wci
        + jnp.pad(p["bc"], ((0, 0), (0, out_pad - out_dim)))
    ).astype(jnp.float32)                                        # [1, Op]

    # Batch tile: big enough to fill the MXU, clamped so small batches are one step.
    tb = min(tb, max(8, pl.cdiv(B, 8) * 8))
    pB = pl.cdiv(B, tb) * tb
    if pB != B:
        text_mean = jnp.pad(text_mean, ((0, pB - B), (0, 0)))
        img_flat = jnp.pad(img_flat, ((0, pB - B), (0, 0)))

    # bf16 operands halve the dominant HBM traffic; MXU still accumulates in f32.
    cd = compute_dtype
    text_mean = text_mean.astype(cd)
    img_flat = img_flat.astype(cd)
    wt = p["wt"].astype(cd)
    wi = p["wi"].astype(cd)
    wct = wct.astype(cd)
    wci = wci.astype(cd)

    def resident(arr):
        # Constant block index -> DMA'd once, stays resident in VMEM across steps.
        return pl.BlockSpec(arr.shape, lambda i: (0, 0))

    out = pl.pallas_call(
        late_fusion_kernel,
        out_shape=jax.ShapeDtypeStruct((pB, out_pad), jnp.float32),
        grid=(pB // tb,),
        in_specs=[
            pl.BlockSpec((tb, E), lambda i: (i, 0)),     # text activations
            pl.BlockSpec((tb, chw), lambda i: (i, 0)),   # image activations
            resident(wt), resident(wi),
            resident(wct), resident(wci), resident(b_total),
        ],
        out_specs=pl.BlockSpec((tb, out_pad), lambda i: (i, 0)),
        compiler_params=pltpu.CompilerParams(
            dimension_semantics=("parallel",),   # shard batch grid across v7x TCs
        ),
    )(text_mean, img_flat, wt, wi, wct, wci, b_total)

    return out[:B, :out_dim]


def init_params(key, *, emb_dim, img_flat_dim, text_dim, image_dim, output_dim):
    ks = jax.random.split(key, 3)

    def lin_w(k, fan_in, fan_out):
        return (jax.random.normal(k, (fan_in, fan_out), jnp.float32)
                / jnp.sqrt(jnp.float32(fan_in)))

    combined = text_dim + image_dim
    return dict(
        # synthetic text / image backbones
        wt=lin_w(ks[0], emb_dim, text_dim),
        bt=jnp.zeros((1, text_dim), jnp.float32),
        wi=lin_w(ks[1], img_flat_dim, image_dim),
        bi=jnp.zeros((1, image_dim), jnp.float32),
        # late-fusion classifier: Linear(text_dim + image_dim -> output_dim)
        wc=lin_w(ks[2], combined, output_dim),
        bc=jnp.zeros((1, output_dim), jnp.float32),
    )


def reference_forward(text_input, image_input, p):
    """Plain-JAX f32 reference mirroring the PyTorch forward (eval mode)."""
    B = text_input.shape[0]
    text_feat = jnp.mean(text_input, axis=1) @ p["wt"] + p["bt"]
    img_feat = image_input.reshape(B, -1) @ p["wi"] + p["bi"]
    combined = jnp.concatenate([text_feat, img_feat], axis=1)
    return combined @ p["wc"] + p["bc"]   # Dropout is identity in eval


if __name__ == "__main__":
    # Small shapes consistent with the module's forward signature.
    B, S, E = 2, 8, 32              # text_input: [batch, seq, emb]
    C, H, W = 3, 16, 16             # image_input: [batch, 3, H, W] (NCHW)
    TEXT_DIM, IMAGE_DIM = 256, 512  # text_model / image_model output dims (lane multiples)
    OUTPUT_DIM = 1                  # binary classification logit

    key = jax.random.PRNGKey(0)
    k_text, k_img, k_params = jax.random.split(key, 3)
    text_input = jax.random.normal(k_text, (B, S, E), jnp.float32)
    image_input = jax.random.normal(k_img, (B, C, H, W), jnp.float32)

    params = init_params(
        k_params,
        emb_dim=E,
        img_flat_dim=C * H * W,
        text_dim=TEXT_DIM,
        image_dim=IMAGE_DIM,
        output_dim=OUTPUT_DIM,
    )

    logits = late_fusion_forward(text_input, image_input, params)
    jax.block_until_ready(logits)

    ref = reference_forward(text_input, image_input, params)
    assert logits.shape == (B, OUTPUT_DIM), logits.shape
    # bf16 matmul operands (f32 accumulation): tolerance relaxed from 1e-4.
    assert jnp.allclose(logits, ref, atol=2e-2, rtol=2e-2), (logits, ref)

    print("KERNEL_OK")
</pallas_src>

<mosaic_0001>
module attributes {stable_mosaic.version = 11 : i64} {
  func.func @late_fusion_kernel(%arg0: i32, %arg1: memref<8x32xbf16, #tpu.memory_space<vmem>>, %arg2: memref<8x768xbf16, #tpu.memory_space<vmem>>, %arg3: memref<32x256xbf16, #tpu.memory_space<vmem>>, %arg4: memref<768x512xbf16, #tpu.memory_space<vmem>>, %arg5: memref<256x128xbf16, #tpu.memory_space<vmem>>, %arg6: memref<512x128xbf16, #tpu.memory_space<vmem>>, %arg7: memref<1x128xf32, #tpu.memory_space<vmem>>, %arg8: memref<8x128xf32, #tpu.memory_space<vmem>>) attributes {dimension_semantics = [#tpu.dimension_semantics<parallel>], iteration_bounds = array<i64: 1>, scalar_prefetch = 0 : i64, scratch_operands = 0 : i64, tpu.core_type = #tpu.core_type<tc>, window_params = [{transform_indices = @transform_0, window_bounds = array<i64: 8, 32>}, {transform_indices = @transform_1, window_bounds = array<i64: 8, 768>}, {pipeline_mode = #tpu.pipeline_mode<synchronous>, transform_indices = @transform_2, window_bounds = array<i64: 32, 256>}, {pipeline_mode = #tpu.pipeline_mode<synchronous>, transform_indices = @transform_3, window_bounds = array<i64: 768, 512>}, {pipeline_mode = #tpu.pipeline_mode<synchronous>, transform_indices = @transform_4, window_bounds = array<i64: 256, 128>}, {pipeline_mode = #tpu.pipeline_mode<synchronous>, transform_indices = @transform_5, window_bounds = array<i64: 512, 128>}, {pipeline_mode = #tpu.pipeline_mode<synchronous>, transform_indices = @transform_6, window_bounds = array<i64: 1, 128>}, {transform_indices = @transform_7, window_bounds = array<i64: 8, 128>}]} {
    %c0 = arith.constant 0 : index
    %c0_0 = arith.constant 0 : index
    %0 = vector.load %arg1[%c0, %c0_0] : memref<8x32xbf16, #tpu.memory_space<vmem>>, vector<8x32xbf16>
    %c0_1 = arith.constant 0 : index
    %c0_2 = arith.constant 0 : index
    %1 = vector.load %arg3[%c0_1, %c0_2] : memref<32x256xbf16, #tpu.memory_space<vmem>>, vector<32x256xbf16>
    %cst = arith.constant dense<0.000000e+00> : vector<8x256xf32>
    %2 = tpu.matmul %0, %1, %cst {dimension_numbers = #tpu.dot_dimension_numbers<[1], [0], [0], [1], [0, 0, 1, 1], [], []>} : vector<8x32xbf16>, vector<32x256xbf16>, vector<8x256xf32> -> vector<8x256xf32>
    %c0_3 = arith.constant 0 : index
    %c0_4 = arith.constant 0 : index
    %3 = vector.load %arg2[%c0_3, %c0_4] : memref<8x768xbf16, #tpu.memory_space<vmem>>, vector<8x768xbf16>
    %c0_5 = arith.constant 0 : index
    %c0_6 = arith.constant 0 : index
    %4 = vector.load %arg4[%c0_5, %c0_6] : memref<768x512xbf16, #tpu.memory_space<vmem>>, vector<768x512xbf16>
    %cst_7 = arith.constant dense<0.000000e+00> : vector<8x512xf32>
    %5 = tpu.matmul %3, %4, %cst_7 {dimension_numbers = #tpu.dot_dimension_numbers<[1], [0], [0], [1], [0, 0, 1, 1], [], []>} : vector<8x768xbf16>, vector<768x512xbf16>, vector<8x512xf32> -> vector<8x512xf32>
    %6 = arith.truncf %2 : vector<8x256xf32> to vector<8x256xbf16>
    %c0_8 = arith.constant 0 : index
    %c0_9 = arith.constant 0 : index
    %7 = vector.load %arg5[%c0_8, %c0_9] : memref<256x128xbf16, #tpu.memory_space<vmem>>, vector<256x128xbf16>
    %cst_10 = arith.constant dense<0.000000e+00> : vector<8x128xf32>
    %8 = tpu.matmul %6, %7, %cst_10 {dimension_numbers = #tpu.dot_dimension_numbers<[1], [0], [0], [1], [0, 0, 1, 1], [], []>} : vector<8x256xbf16>, vector<256x128xbf16>, vector<8x128xf32> -> vector<8x128xf32>
    %9 = arith.truncf %5 : vector<8x512xf32> to vector<8x512xbf16>
    %c0_11 = arith.constant 0 : index
    %c0_12 = arith.constant 0 : index
    %10 = vector.load %arg6[%c0_11, %c0_12] : memref<512x128xbf16, #tpu.memory_space<vmem>>, vector<512x128xbf16>
    %cst_13 = arith.constant dense<0.000000e+00> : vector<8x128xf32>
    %11 = tpu.matmul %9, %10, %cst_13 {dimension_numbers = #tpu.dot_dimension_numbers<[1], [0], [0], [1], [0, 0, 1, 1], [], []>} : vector<8x512xbf16>, vector<512x128xbf16>, vector<8x128xf32> -> vector<8x128xf32>
    %12 = arith.addf %8, %11 : vector<8x128xf32>
    %c0_14 = arith.constant 0 : index
    %c0_15 = arith.constant 0 : index
    %13 = vector.load %arg7[%c0_14, %c0_15] : memref<1x128xf32, #tpu.memory_space<vmem>>, vector<1x128xf32>
    %14 = vector.broadcast %13 : vector<1x128xf32> to vector<8x128xf32>
    %15 = arith.addf %12, %14 : vector<8x128xf32>
    %c0_16 = arith.constant 0 : index
    %c0_17 = arith.constant 0 : index
    %16 = vector.load %arg8[%c0_16, %c0_17] : memref<8x128xf32, #tpu.memory_space<vmem>>, vector<8x128xf32>
    tpu.vector_store %arg8[%c0_16, %c0_17], %15 {strides = array<i32>} : memref<8x128xf32, #tpu.memory_space<vmem>>, vector<8x128xf32>,
    return
  }
  func.func @transform_0(%arg0: i32) -> (i32, i32) {
    %c0_i32 = arith.constant 0 : i32
    %c0_i32_0 = arith.constant 0 : i32
    return %arg0, %c0_i32 : i32, i32
  }
  func.func @transform_1(%arg0: i32) -> (i32, i32) {
    %c0_i32 = arith.constant 0 : i32
    %c0_i32_0 = arith.constant 0 : i32
    return %arg0, %c0_i32 : i32, i32
  }
  func.func @transform_2(%arg0: i32) -> (i32, i32) {
    %c0_i32 = arith.constant 0 : i32
    %c0_i32_0 = arith.constant 0 : i32
    %c0_i32_1 = arith.constant 0 : i32
    return %c0_i32, %c0_i32_0 : i32, i32
  }
  func.func @transform_3(%arg0: i32) -> (i32, i32) {
    %c0_i32 = arith.constant 0 : i32
    %c0_i32_0 = arith.constant 0 : i32
    %c0_i32_1 = arith.constant 0 : i32
    return %c0_i32, %c0_i32_0 : i32, i32
  }
  func.func @transform_4(%arg0: i32) -> (i32, i32) {
    %c0_i32 = arith.constant 0 : i32
    %c0_i32_0 = arith.constant 0 : i32
    %c0_i32_1 = arith.constant 0 : i32
    return %c0_i32, %c0_i32_0 : i32, i32
  }
  func.func @transform_5(%arg0: i32) -> (i32, i32) {
    %c0_i32 = arith.constant 0 : i32
    %c0_i32_0 = arith.constant 0 : i32
    %c0_i32_1 = arith.constant 0 : i32
    return %c0_i32, %c0_i32_0 : i32, i32
  }
  func.func @transform_6(%arg0: i32) -> (i32, i32) {
    %c0_i32 = arith.constant 0 : i32
    %c0_i32_0 = arith.constant 0 : i32
    %c0_i32_1 = arith.constant 0 : i32
    return %c0_i32, %c0_i32_0 : i32, i32
  }
  func.func @transform_7(%arg0: i32) -> (i32, i32) {
    %c0_i32 = arith.constant 0 : i32
    %c0_i32_0 = arith.constant 0 : i32
    return %arg0, %c0_i32 : i32, i32
  }
}

</mosaic_0001>

<bundles_post_ra>
// kernel: tpu_custom_call.1
= control target key start
LH: loop header
LB: loop body
LE: loop exit
PB: predicated region body
PF: predicated region fallthrough
CT: control target
= control target key end

     0   :  { %12 = vsyncpa [#allocation3], 0  ;;  %s3081_s0 = inlined_call_operand.hbm [shape: bf16[8,32], index: 0, kind: input, shape index: {}]   ;;  %s3082_s1 = inlined_call_operand.hbm [shape: bf16[8,768], index: 1, kind: input, shape index: {}]   ;;  %s3083_s2 = inlined_call_operand.hbm [shape: bf16[32,256], index: 2, kind: input, shape index: {}]   ;;  %s3084_s3 = inlined_call_operand.hbm [shape: bf16[768,512], index: 3, kind: input, shape index: {}]   ;;  %s3085_s4 = inlined_call_operand.hbm [shape: bf16[256,128], index: 4, kind: input, shape index: {}]   ;;  %s3086_s5 = inlined_call_operand.hbm [shape: bf16[512,128], index: 5, kind: input, shape index: {}]   ;;  %s3087_s6 = inlined_call_operand.vmem [shape: f32[1,128], index: 6, kind: input, shape index: {}]   ;;  %s3088_s7 = inlined_call_operand.hbm [shape: f32[8,128], index: 7, kind: output, shape index: {}]  }
   0x1   :  { %13 = vsyncpa [#allocation6], 0 }
   0x2   :  { %14 = vsyncpa [#allocation9], 0 }
   0x3   :  { %15 = vsyncpa [#allocation12], 0 }
   0x4   :  { %16 = vsyncpa [#allocation4], 0  ;;  %s2965_s24 = smov [#allocation5]   ;;  %s2966_s26 = smov [#allocation8]  }
   0x5   :  { %s33_s25 = sshll.u32 %s2965_s24, 4  ;;  %s54_s27 = sshll.u32 %s2966_s26, 4  ;;  %s34_s25 = int_to_ptr.vmem [resolvable:$true] %s33_s25  ;;  %s55_s27 = int_to_ptr.vmem [resolvable:$true] %s54_s27 }
   0x6   :  { %s2823_s28 = scalar_lea.vmem %s34_s25, 384  ;;  %p2828_p1 = scmp.lt.s32.totalorder %s34_s25, %s34_s25 }
   0x7   :  { %p2824_p0 = scmp.ne.s32.totalorder %s34_s25, %s2823_s28  ;;  %p2829_p2 = scmp.lt.s32.totalorder %s2823_s28, %s2823_s28 }
   0x9   :  { %p2830_p3 = por %p2829_p2, %p2828_p1 }
   0xb   :  { %p2831_p4 = pnand %p2830_p3, %p2824_p0 }
   0xd   :  { %2834 = shalt.err (!%p2831_p4)
}
   0xe   :  { %36 = dma.hbm_to_vmem [thread:$0]  %s3082_s1, 384, %s34_s25, [#allocation6]  }
   0xf   :  { %s2843_s8 = scalar_lea.vmem %s55_s27, 24576  ;;  %p2848_p6 = scmp.lt.s32.totalorder %s55_s27, %s55_s27 }
  0x10   :  { %p2844_p5 = scmp.ne.s32.totalorder %s55_s27, %s2843_s8  ;;  %p2849_p7 = scmp.lt.s32.totalorder %s2843_s8, %s2843_s8 }
  0x12   :  { %p2850_p8 = por %p2849_p7, %p2848_p6 }
  0x14   :  { %p2851_p9 = pnand %p2850_p8, %p2844_p5 }
  0x16   :  { %2854 = shalt.err (!%p2851_p9)
}
  0x17   :  { %s2967_s9 = smov 256   ;;  %s2968_s10 = smov 16  }
  0x18   :  { %60 = dma.hbm_to_vmem [thread:$0]  %s3084_s3, 24576, %s55_s27, [#allocation9], %s2967_s9, %s2967_s9, %s2968_s10  }
  0x19   :  { %s2969_s13 = smov [#allocation2]   ;;  %s2970_s15 = smov [#allocation7]  }
  0x1a   :  { %s23_s14 = sshll.u32 %s2969_s13, 4  ;;  %s42_s16 = sshll.u32 %s2970_s15, 4  ;;  %s24_s14 = int_to_ptr.vmem [resolvable:$true] %s23_s14  ;;  %s43_s16 = int_to_ptr.vmem [resolvable:$true] %s42_s16 }
  0x1b   :  { %s2863_s1 = scalar_lea.vmem %s24_s14, 64  ;;  %p2868_p11 = scmp.lt.s32.totalorder %s24_s14, %s24_s14 }
  0x1c   :  { %p2864_p10 = scmp.ne.s32.totalorder %s24_s14, %s2863_s1  ;;  %p2869_p12 = scmp.lt.s32.totalorder %s2863_s1, %s2863_s1 }
  0x1e   :  { %p2870_p13 = por %p2869_p12, %p2868_p11 }
  0x20   :  { %p2871_p0 = pnand %p2870_p13, %p2864_p10 }
  0x22   :  { %2874 = shalt.err (!%p2871_p0)
}
  0x23   :  { %26 = dma.hbm_to_vmem [thread:$0]  %s3081_s0, 64, %s24_s14, [#allocation3]  }
  0x24   :  { %s2883_s19 = scalar_lea.vmem %s43_s16, 512  ;;  %p2888_p2 = scmp.lt.s32.totalorder %s43_s16, %s43_s16 }
  0x25   :  { %p2884_p1 = scmp.ne.s32.totalorder %s43_s16, %s2883_s19  ;;  %p2889_p3 = scmp.lt.s32.totalorder %s2883_s19, %s2883_s19 }
  0x27   :  { %p2890_p4 = por %p2889_p3, %p2888_p2 }
  0x29   :  { %p2891_p5 = pnand %p2890_p4, %p2884_p1 }
  0x2b   :  { %2894 = shalt.err (!%p2891_p5)
}
  0x2c   :  { %s2971_s3 = smov 128   ;;  %s2972_s20 = smov 8  }
  0x2d   :  { %48 = dma.hbm_to_vmem [thread:$0]  %s3083_s2, 512, %s43_s16, [#allocation6], %s2971_s3, %s2971_s3, %s2972_s20  }
  0x2e   :  { %s2973_s23 = smov [#allocation10]  }
  0x2f   :  { %s66_s24 = sshll.u32 %s2973_s23, 4  ;;  %s67_s24 = int_to_ptr.vmem [resolvable:$true] %s66_s24 }
  0x30   :  { %s2903_s25 = scalar_lea.vmem %s67_s24, 2048  ;;  %p2908_p7 = scmp.lt.s32.totalorder %s67_s24, %s67_s24 }
  0x31   :  { %p2904_p6 = scmp.ne.s32.totalorder %s67_s24, %s2903_s25  ;;  %p2909_p8 = scmp.lt.s32.totalorder %s2903_s25, %s2903_s25 }
  0x33   :  { %p2910_p9 = por %p2909_p8, %p2908_p7 }
  0x35   :  { %p2911_p10 = pnand %p2910_p9, %p2904_p6 }
  0x37   :  { %2914 = shalt.err (!%p2911_p10)
}
  0x38   :  { %s2974_s0 = smov 64   ;;  %s2975_s26 = smov 4  }
  0x39   :  { %72 = dma.hbm_to_vmem [thread:$0]  %s3085_s4, 2048, %s67_s24, [#allocation9], %s2974_s0, %s2974_s0, %s2975_s26  }
  0x3a   :  { %s2976_s29 = smov [#allocation11]  }
  0x3b   :  { %s78_s30 = sshll.u32 %s2976_s29, 4  ;;  %s79_s30 = int_to_ptr.vmem [resolvable:$true] %s78_s30 }
  0x3c   :  { %s2923_s2 = scalar_lea.vmem %s79_s30, 4096  ;;  %p2928_p12 = scmp.lt.s32.totalorder %s79_s30, %s79_s30 }
  0x3d   :  { %p2924_p11 = scmp.ne.s32.totalorder %s79_s30, %s2923_s2  ;;  %p2929_p13 = scmp.lt.s32.totalorder %s2923_s2, %s2923_s2 }
  0x3f   :  { %p2930_p0 = por %p2929_p13, %p2928_p12 }
  0x41   :  { %p2931_p1 = pnand %p2930_p0, %p2924_p11 }
  0x43   :  { %2934 = shalt.err (!%p2931_p1)
}
  0x44   :  { %84 = dma.hbm_to_vmem [thread:$0]  %s3086_s5, 4096, %s79_s30, [#allocation12], %s2974_s0, %s2974_s0, %s2975_s26  }
  0x45   :  { %2955 = dma.done.wait [#allocation3], 64  }
  0x46   :  { %2956 = vsyncadd [#allocation3], 4294967232 }
  0x47   :  { %2957 = dma.done.wait [#allocation6], 896  }
  0x48   :  { %2958 = vsyncadd [#allocation6], 4294966400 }
  0x49   :  { %2959 = dma.done.wait [#allocation9], 26624  }
  0x4a   :  { %2960 = vsyncadd [#allocation9], 4294940672 }
  0x4b   :  { %2961 = dma.done.wait [#allocation12], 4096  }
  0x4c   :  { %2962 = vsyncadd [#allocation12], 4294963200  ;;  %v2977_v0 = vmov 0   ;;  %v2467_v1 = vld [vmem:[#allocation7 + $0x14] ss:$8 sps:$4 sm:$0xff]   ;;  %vm131_vm0 = vcmask 261120  }
  0x4d   :  { %167 = vmatprep.mubr.bf16.mxu0 %v2977_v0  ;;  %v2469_v2 = vld [vmem:[#allocation8 + $0xe4] ss:$16 sps:$4 sm:$0xff]   ;;  %147 = vmatprep.subr.bf16.mxu0 %v2467_v1  ;;  %v2471_v3 = vld [vmem:[#allocation7 + $0x10] ss:$8 sps:$4 sm:$0xff]   ;;  %v2477_v7 = vld [vmem:[#allocation7] ss:$8 sps:$4 sm:$0xff]  }
  0x4e   :  { %v2472_v4 = vld [vmem:[#allocation8 + $0xe0] ss:$16 sps:$4 sm:$0xff]   ;;  %1352 = vmatprep.subr.bf16.mxu1 %v2469_v2  ;;  %v2473_v5 = vld [vmem:[#allocation7 + $0x4] ss:$8 sps:$4 sm:$0xff]   ;;  %148 = vmatpush1.bf16.msra.mxu0 %v2471_v3  ;;  %s2978_s10 = smov [#allocation13]  }
  0x4f   :  { %1353 = vmatpush1.bf16.msra.mxu1 %v2472_v4  ;;  %v2475_v6 = vld [vmem:[#allocation8 + $0xc4] ss:$16 sps:$4 sm:$0xff]   ;;  %149 = vmatprep.subr.bf16.mxu0 %v2473_v5  ;;  %v2478_v8 = vld [vmem:[#allocation8 + $0xc0] ss:$16 sps:$4 sm:$0xff]   ;;  %v176_v48 = vld [vmem:[#allocation5] sm:$0xff]  ;;  %s2123_s11 = sshll.u32 %s2978_s10, 4  ;;  %s2124_s11 = int_to_ptr.vmem [resolvable:$true] %s2123_s11 }
  0x50   :  { %1354 = vmatprep.subr.bf16.mxu1 %v2475_v6  ;;  %v106_v9 = vld [vmem:[#allocation2] sm:$0xf]  ;;  %v2481_v11 = vld [vmem:[#allocation8 + $0x2e0] ss:$16 sps:$4 sm:$0xff]   ;;  %v3037_v51 = vcombine.high %v176_v48, %v176_v48  ;;  %s2935_s12 = scalar_lea.vmem %s2124_s11, 128  ;;  %p2940_p3 = scmp.lt.s32.totalorder %s2124_s11, %s2124_s11 }
  0x51   :  { %v2479_v10 = vld [vmem:[#allocation8 + $0xa4] ss:$16 sps:$4 sm:$0xff]   ;;  %v2484_v13 = vld [vmem:[#allocation8 + $0xa0] ss:$16 sps:$4 sm:$0xff]   ;;  %p2936_p2 = scmp.ne.s32.totalorder %s2124_s11, %s2935_s12  ;;  %p2941_p4 = scmp.lt.s32.totalorder %s2935_s12, %s2935_s12 }
  0x52   :  { %v2483_v12 = vld [vmem:[#allocation8 + $0x2e4] ss:$16 sps:$4 sm:$0xff]   ;;  %150 = vmatpush1.bf16.msra.mxu0 %v2477_v7  ;;  %v2487_v16 = vld [vmem:[#allocation8 + $0x2c0] ss:$16 sps:$4 sm:$0xff]   ;;  %1384 = vmatprep.mubr.bf16.mxu1 %v3037_v51 }
  0x53   :  { %1355 = vmatpush1.bf16.msra.mxu1 %v2478_v8  ;;  %1393 = vmatprep.subr.bf16.mxu0 %v2483_v12  ;;  %v2485_v14 = vld [vmem:[#allocation8 + $0x84] ss:$16 sps:$4 sm:$0xff]   ;;  %v2490_v17 = vld [vmem:[#allocation8 + $0x80] ss:$16 sps:$4 sm:$0xff]   ;;  %v3043_v8 = vcombine.low %v176_v48, %v176_v48  ;;  %p2942_p5 = por %p2941_p4, %p2940_p3 }
  0x54   :  { %1356 = vmatprep.subr.bf16.mxu1 %v2479_v10  ;;  %v2489_v15 = vld [vmem:[#allocation8 + $0x2c4] ss:$16 sps:$4 sm:$0xff]   ;;  %v2493_v20 = vld [vmem:[#allocation8 + $0x2a0] ss:$16 sps:$4 sm:$0xff]  }
  0x55   :  { %2139 = vmatmul.mubr.msk.bf16.vlgmr.msra.gmra.mxu0 %vm131_vm0, %v106_v9  ;;  %v2491_v18 = vld [vmem:[#allocation8 + $0x64] ss:$16 sps:$4 sm:$0xff]   ;;  %v2496_v21 = vld [vmem:[#allocation8 + $0x60] ss:$16 sps:$4 sm:$0xff]   ;;  %p2943_p6 = pnand %p2942_p5, %p2936_p2 }
  0x56   :  { %1394 = vmatpush1.bf16.msra.mxu0 %v2481_v11  ;;  %v2495_v19 = vld [vmem:[#allocation8 + $0x2a4] ss:$16 sps:$4 sm:$0xff]   ;;  %v2499_v24 = vld [vmem:[#allocation8 + $0x280] ss:$16 sps:$4 sm:$0xff]  }
  0x57   :  { %1357 = vmatpush1.bf16.msra.mxu1 %v2484_v13  ;;  %1395 = vmatprep.subr.bf16.mxu0 %v2489_v15  ;;  %v2497_v22 = vld [vmem:[#allocation8 + $0x44] ss:$16 sps:$4 sm:$0xff]   ;;  %v2502_v25 = vld [vmem:[#allocation8 + $0x40] ss:$16 sps:$4 sm:$0xff]  }
  0x58   :  { %1358 = vmatprep.subr.bf16.mxu1 %v2485_v14  ;;  %v2501_v23 = vld [vmem:[#allocation8 + $0x284] ss:$16 sps:$4 sm:$0xff]   ;;  %v2505_v28 = vld [vmem:[#allocation8 + $0x260] ss:$16 sps:$4 sm:$0xff]  }
  0x59   :  { %v2503_v26 = vld [vmem:[#allocation8 + $0x24] ss:$16 sps:$4 sm:$0xff]   ;;  %v2508_v29 = vld [vmem:[#allocation8 + $0x20] ss:$16 sps:$4 sm:$0xff]  }
  0x5a   :  { %1396 = vmatpush1.bf16.msra.mxu0 %v2487_v16  ;;  %v2507_v27 = vld [vmem:[#allocation8 + $0x264] ss:$16 sps:$4 sm:$0xff]   ;;  %v2511_v32 = vld [vmem:[#allocation8 + $0x240] ss:$16 sps:$4 sm:$0xff]   ;;  %v2584_v16 = vld [vmem:[#allocation8 + $0xec] ss:$16 sps:$4 sm:$0xff]  }
  0x5b   :  { %1359 = vmatpush1.bf16.msra.mxu1 %v2490_v17  ;;  %1397 = vmatprep.subr.bf16.mxu0 %v2495_v19  ;;  %v2509_v30 = vld [vmem:[#allocation8 + $0x4] ss:$16 sps:$4 sm:$0xff]   ;;  %v2514_v33 = vld [vmem:[#allocation8] ss:$16 sps:$4 sm:$0xff]   ;;  %v2582_v19 = vld [vmem:[#allocation8 + $0xe8] ss:$16 sps:$4 sm:$0xff]  }
  0x5c   :  { %1360 = vmatprep.subr.bf16.mxu1 %v2491_v18  ;;  %v2513_v31 = vld [vmem:[#allocation8 + $0x244] ss:$16 sps:$4 sm:$0xff]   ;;  %v2517_v36 = vld [vmem:[#allocation8 + $0x220] ss:$16 sps:$4 sm:$0xff]  }
  0x5d   :  { %v2515_v34 = vld [vmem:[#allocation8 + $0x1e4] ss:$16 sps:$4 sm:$0xff]   ;;  %v2520_v37 = vld [vmem:[#allocation8 + $0x1e0] ss:$16 sps:$4 sm:$0xff]  }
  0x5e   :  { %1398 = vmatpush1.bf16.msra.mxu0 %v2493_v20  ;;  %v2519_v35 = vld [vmem:[#allocation8 + $0x224] ss:$16 sps:$4 sm:$0xff]   ;;  %v2523_v40 = vld [vmem:[#allocation8 + $0x200] ss:$16 sps:$4 sm:$0xff]  }
  0x5f   :  { %1361 = vmatpush1.bf16.msra.mxu1 %v2496_v21  ;;  %1399 = vmatprep.subr.bf16.mxu0 %v2501_v23  ;;  %v2521_v38 = vld [vmem:[#allocation8 + $0x1c4] ss:$16 sps:$4 sm:$0xff]   ;;  %v2526_v41 = vld [vmem:[#allocation8 + $0x1c0] ss:$16 sps:$4 sm:$0xff]   ;;  %v2590_v21 = vld [vmem:[#allocation8 + $0xcc] ss:$16 sps:$4 sm:$0xff]  }
  0x60   :  { %1362 = vmatprep.subr.bf16.mxu1 %v2497_v22  ;;  %v2525_v39 = vld [vmem:[#allocation8 + $0x204] ss:$16 sps:$4 sm:$0xff]   ;;  %v2529_v44 = vld [vmem:[#allocation8 + $0x3e0] ss:$16 sps:$4 sm:$0xff]   ;;  %v2588_v23 = vld [vmem:[#allocation8 + $0xc8] ss:$16 sps:$4 sm:$0xff]  }
  0x61   :  { %v2527_v42 = vld [vmem:[#allocation8 + $0x1a4] ss:$16 sps:$4 sm:$0xff]   ;;  %v2532_v45 = vld [vmem:[#allocation8 + $0x1a0] ss:$16 sps:$4 sm:$0xff]  }
  0x62   :  { %1400 = vmatpush1.bf16.msra.mxu0 %v2499_v24  ;;  %v2531_v43 = vld [vmem:[#allocation8 + $0x3e4] ss:$16 sps:$4 sm:$0xff]   ;;  %v2535_v49 = vld [vmem:[#allocation8 + $0x3c0] ss:$16 sps:$4 sm:$0xff]  }
  0x63   :  { %1363 = vmatpush1.bf16.msra.mxu1 %v2502_v25  ;;  %1401 = vmatprep.subr.bf16.mxu0 %v2507_v27  ;;  %v2533_v46 = vld [vmem:[#allocation8 + $0x184] ss:$16 sps:$4 sm:$0xff]   ;;  %v2538_v50 = vld [vmem:[#allocation8 + $0x180] ss:$16 sps:$4 sm:$0xff]   ;;  %v2596_v25 = vld [vmem:[#allocation8 + $0xac] ss:$16 sps:$4 sm:$0xff]  }
  0x64   :  { %1364 = vmatprep.subr.bf16.mxu1 %v2503_v26  ;;  %v2537_v47 = vld [vmem:[#allocation8 + $0x3c4] ss:$16 sps:$4 sm:$0xff]   ;;  %v2541_v54 = vld [vmem:[#allocation8 + $0x3a0] ss:$16 sps:$4 sm:$0xff]   ;;  %v2594_v27 = vld [vmem:[#allocation8 + $0xa8] ss:$16 sps:$4 sm:$0xff]  }
  0x65   :  { %v2539_v52 = vld [vmem:[#allocation8 + $0x164] ss:$16 sps:$4 sm:$0xff]   ;;  %v2544_v55 = vld [vmem:[#allocation8 + $0x160] ss:$16 sps:$4 sm:$0xff]  }
  0x66   :  { %1402 = vmatpush1.bf16.msra.mxu0 %v2505_v28  ;;  %v2543_v53 = vld [vmem:[#allocation8 + $0x3a4] ss:$16 sps:$4 sm:$0xff]   ;;  %v2547_v60 = vld [vmem:[#allocation8 + $0x380] ss:$16 sps:$4 sm:$0xff]  }
  0x67   :  { %1365 = vmatpush1.bf16.msra.mxu1 %v2508_v29  ;;  %1403 = vmatprep.subr.bf16.mxu0 %v2513_v31  ;;  %v2545_v56 = vld [vmem:[#allocation8 + $0x144] ss:$16 sps:$4 sm:$0xff]   ;;  %v2550_v61 = vld [vmem:[#allocation8 + $0x140] ss:$16 sps:$4 sm:$0xff]   ;;  %v2602_v29 = vld [vmem:[#allocation8 + $0x8c] ss:$16 sps:$4 sm:$0xff]  }
  0x68   :  { %1366 = vmatprep.subr.bf16.mxu1 %v2509_v30  ;;  %v177_v57 = vld [vmem:[#allocation5 + $0x8] sm:$0xff]  ;;  %v2600_v31 = vld [vmem:[#allocation8 + $0x88] ss:$16 sps:$4 sm:$0xff]  }
  0x69   :  { %v2549_v58 = vld [vmem:[#allocation8 + $0x384] ss:$16 sps:$4 sm:$0xff]   ;;  %v3040_v59 = vcombine.high %v177_v57, %v177_v57  ;;  %v2553_v0 = vld [vmem:[#allocation8 + $0x360] ss:$16 sps:$4 sm:$0xff]   ;;  %v3046_v17 = vcombine.low %v177_v57, %v177_v57  ;;  %v2636_v57 = vld [vmem:[#allocation8 + $0x1c8] ss:$16 sps:$4 sm:$0xff]  }
  0x6a   :  { %1404 = vmatpush1.bf16.msra.mxu0 %v2511_v32  ;;  %v2551_v62 = vld [vmem:[#allocation8 + $0x124] ss:$16 sps:$4 sm:$0xff]   ;;  %v2556_v1 = vld [vmem:[#allocation8 + $0x120] ss:$16 sps:$4 sm:$0xff]  }
  0x6b   :  { %1367 = vmatpush1.bf16.msra.mxu1 %v2514_v33  ;;  %1405 = vmatprep.subr.bf16.mxu0 %v2519_v35  ;;  %v2555_v63 = vld [vmem:[#allocation8 + $0x364] ss:$16 sps:$4 sm:$0xff]   ;;  %v2559_v4 = vld [vmem:[#allocation8 + $0x340] ss:$16 sps:$4 sm:$0xff]   ;;  %v2608_v33 = vld [vmem:[#allocation8 + $0x6c] ss:$16 sps:$4 sm:$0xff]  }
  0x6c   :  { %1368 = vmatprep.subr.bf16.mxu1 %v2515_v34  ;;  %1425 = vmatprep.mubr.bf16.mxu0 %v3040_v59  ;;  %v2557_v2 = vld [vmem:[#allocation8 + $0x104] ss:$16 sps:$4 sm:$0xff]   ;;  %v2562_v5 = vld [vmem:[#allocation8 + $0x100] ss:$16 sps:$4 sm:$0xff]   ;;  %v3050_v34 = vld [vmem:[#allocation5 + $0x10] sm:$0xff] }
  0x6d   :  { %v2561_v3 = vld [vmem:[#allocation8 + $0x344] ss:$16 sps:$4 sm:$0xff]   ;;  %v2565_v9 = vld [vmem:[#allocation8 + $0x320] ss:$16 sps:$4 sm:$0xff]  }
  0x6e   :  { %1406 = vmatpush1.bf16.msra.mxu0 %v2517_v36  ;;  %v2567_v6 = vld [vmem:[#allocation8 + $0x324] ss:$16 sps:$4 sm:$0xff]   ;;  %v2568_v10 = vld [vmem:[#allocation8 + $0x4e0] ss:$16 sps:$4 sm:$0xff]   ;;  %v2606_v36 = vld [vmem:[#allocation8 + $0x68] ss:$16 sps:$4 sm:$0xff]  }
  0x6f   :  { %1369 = vmatpush2.bf16.msra.mxu1 %v2520_v37  ;;  %1407 = vmatprep.subr.bf16.mxu0 %v2525_v39  ;;  %v2570_v7 = vld [vmem:[#allocation8 + $0x4e4] ss:$16 sps:$4 sm:$0xff]   ;;  %v2571_v13 = vld [vmem:[#allocation8 + $0x300] ss:$16 sps:$4 sm:$0xff]   ;;  %v3054_v37 = vcombine.high %v3050_v34, %v3050_v34  ;;  %v2614_v39 = vld [vmem:[#allocation8 + $0x4c] ss:$16 sps:$4 sm:$0xff]  }
  0x70   :  { %1370 = vmatprep.subr.bf16.mxu1 %v2521_v38  ;;  %v2573_v11 = vld [vmem:[#allocation8 + $0x304] ss:$16 sps:$4 sm:$0xff]   ;;  %v2574_v14 = vld [vmem:[#allocation8 + $0x4c0] ss:$16 sps:$4 sm:$0xff]  }
  0x71   :  { %v2576_v12 = vld [vmem:[#allocation8 + $0x4c4] ss:$16 sps:$4 sm:$0xff]   ;;  %v2579_v18 = vld [vmem:[#allocation8 + $0x4a0] ss:$16 sps:$4 sm:$0xff]  }
  0x72   :  { %1408 = vmatpush1.bf16.msra.mxu0 %v2523_v40  ;;  %v2581_v15 = vld [vmem:[#allocation8 + $0x4a4] ss:$16 sps:$4 sm:$0xff]   ;;  %v2585_v22 = vld [vmem:[#allocation8 + $0x480] ss:$16 sps:$4 sm:$0xff]  }
  0x73   :  { %1371 = vmatpush2.bf16.msra.mxu1 %v2526_v41  ;;  %1409 = vmatprep.subr.bf16.mxu0 %v2531_v43  ;;  %v2587_v20 = vld [vmem:[#allocation8 + $0x484] ss:$16 sps:$4 sm:$0xff]   ;;  %v2591_v26 = vld [vmem:[#allocation8 + $0x460] ss:$16 sps:$4 sm:$0xff]   ;;  %v2612_v41 = vld [vmem:[#allocation8 + $0x48] ss:$16 sps:$4 sm:$0xff]  }
  0x74   :  { %1372 = vmatprep.subr.bf16.mxu1 %v2527_v42  ;;  %v2593_v24 = vld [vmem:[#allocation8 + $0x464] ss:$16 sps:$4 sm:$0xff]   ;;  %v2597_v30 = vld [vmem:[#allocation8 + $0x440] ss:$16 sps:$4 sm:$0xff]   ;;  %v2620_v43 = vld [vmem:[#allocation8 + $0x2c] ss:$16 sps:$4 sm:$0xff]  }
  0x75   :  { %v2599_v28 = vld [vmem:[#allocation8 + $0x444] ss:$16 sps:$4 sm:$0xff]   ;;  %v2603_v35 = vld [vmem:[#allocation8 + $0x420] ss:$16 sps:$4 sm:$0xff]  }
  0x76   :  { %1410 = vmatpush2.bf16.msra.mxu0 %v2529_v44  ;;  %v2605_v32 = vld [vmem:[#allocation8 + $0x424] ss:$16 sps:$4 sm:$0xff]   ;;  %v2609_v40 = vld [vmem:[#allocation8 + $0x400] ss:$16 sps:$4 sm:$0xff]  }
  0x77   :  { %1373 = vmatpush2.bf16.msra.mxu1 %v2532_v45  ;;  %1411 = vmatprep.subr.bf16.mxu0 %v2537_v47  ;;  %v2611_v38 = vld [vmem:[#allocation8 + $0x404] ss:$16 sps:$4 sm:$0xff]   ;;  %v2615_v44 = vld [vmem:[#allocation8 + $0x5e0] ss:$16 sps:$4 sm:$0xff]   ;;  %v2618_v45 = vld [vmem:[#allocation8 + $0x28] ss:$16 sps:$4 sm:$0xff]  }
  0x78   :  { %1374 = vmatprep.subr.bf16.mxu1 %v2533_v46  ;;  %v2617_v42 = vld [vmem:[#allocation8 + $0x5e4] ss:$16 sps:$4 sm:$0xff]   ;;  %v2626_v47 = vld [vmem:[#allocation8 + $0xc] ss:$16 sps:$4 sm:$0xff]   ;;  %v2621_v48 = vld [vmem:[#allocation8 + $0x5c0] ss:$16 sps:$4 sm:$0xff]  }
  0x79   :  { %v2623_v46 = vld [vmem:[#allocation8 + $0x5c4] ss:$16 sps:$4 sm:$0xff]  }
  0x7a   :  { %1412 = vmatpush2.bf16.msra.mxu0 %v2535_v49  ;;  %v2624_v49 = vld [vmem:[#allocation8 + $0x8] ss:$16 sps:$4 sm:$0xff]  }
  0x7b   :  { %1375 = vmatpush2.bf16.msra.mxu1 %v2538_v50  ;;  %1413 = vmatprep.subr.bf16.mxu0 %v2543_v53  ;;  %v2629_v50 = vld [vmem:[#allocation8 + $0x5a4] ss:$16 sps:$4 sm:$0xff]   ;;  %v2630_v53 = vld [vmem:[#allocation8 + $0x1e8] ss:$16 sps:$4 sm:$0xff]  }
  0x7c   :  { %1376 = vmatprep.subr.bf16.mxu1 %v2539_v52  ;;  %v2627_v52 = vld [vmem:[#allocation8 + $0x5a0] ss:$16 sps:$4 sm:$0xff]  }
  0x7e   :  { %1414 = vmatpush2.bf16.msra.mxu0 %v2541_v54  ;;  %v2635_v54 = vld [vmem:[#allocation8 + $0x584] ss:$16 sps:$4 sm:$0xff]  }
  0x7f   :  { %1377 = vmatpush2.bf16.msra.mxu1 %v2544_v55  ;;  %1415 = vmatprep.subr.bf16.mxu0 %v2549_v58  ;;  %v2638_v55 = vld [vmem:[#allocation8 + $0x1cc] ss:$16 sps:$4 sm:$0xff]   ;;  %v2641_v58 = vld [vmem:[#allocation8 + $0x564] ss:$16 sps:$4 sm:$0xff]  }
  0x80   :  { %1378 = vmatprep.subr.bf16.mxu1 %v2545_v56  ;;  %v2633_v56 = vld [vmem:[#allocation8 + $0x580] ss:$16 sps:$4 sm:$0xff]  }
  0x82   :  { %1416 = vmatpush2.bf16.msra.mxu0 %v2547_v60  ;;  %v2644_v60 = vld [vmem:[#allocation8 + $0x1ac] ss:$16 sps:$4 sm:$0xff]  }
  0x83   :  { %1379 = vmatpush2.bf16.msra.mxu1 %v2550_v61  ;;  %1417 = vmatprep.subr.bf16.mxu0 %v2555_v63  ;;  %v2639_v61 = vld [vmem:[#allocation8 + $0x560] ss:$16 sps:$4 sm:$0xff]   ;;  %v2647_v63 = vld [vmem:[#allocation8 + $0x544] ss:$16 sps:$4 sm:$0xff]  }
  0x84   :  { %1380 = vmatprep.subr.bf16.mxu1 %v2551_v62  ;;  %v2642_v62 = vld [vmem:[#allocation8 + $0x1a8] ss:$16 sps:$4 sm:$0xff]  }
  0x86   :  { %1418 = vmatpush2.bf16.msra.mxu0 %v2553_v0  ;;  %v2650_v0 = vld [vmem:[#allocation8 + $0x18c] ss:$16 sps:$4 sm:$0xff]  }
  0x87   :  { %1381 = vmatpush2.bf16.msra.mxu1 %v2556_v1  ;;  %1419 = vmatprep.subr.bf16.mxu0 %v2561_v3  ;;  %v2645_v1 = vld [vmem:[#allocation8 + $0x540] ss:$16 sps:$4 sm:$0xff]   ;;  %v2653_v3 = vld [vmem:[#allocation8 + $0x524] ss:$16 sps:$4 sm:$0xff]  }
  0x88   :  { %1382 = vmatprep.subr.bf16.mxu1 %v2557_v2  ;;  %v2648_v2 = vld [vmem:[#allocation8 + $0x188] ss:$16 sps:$4 sm:$0xff]  }
  0x8a   :  { %1420 = vmatpush2.bf16.msra.mxu0 %v2559_v4  ;;  %v2656_v4 = vld [vmem:[#allocation8 + $0x16c] ss:$16 sps:$4 sm:$0xff]  }
  0x8b   :  { %1383 = vmatpush2.bf16.msra.mxu1 %v2562_v5  ;;  %1421 = vmatprep.subr.bf16.mxu0 %v2567_v6  ;;  %v2651_v5 = vld [vmem:[#allocation8 + $0x520] ss:$16 sps:$4 sm:$0xff]   ;;  %v2654_v6 = vld [vmem:[#allocation8 + $0x168] ss:$16 sps:$4 sm:$0xff]  }
  0x8c   :  { %1434 = vmatprep.subr.bf16.mxu1 %v2570_v7  ;;  %v2659_v7 = vld [vmem:[#allocation8 + $0x504] ss:$16 sps:$4 sm:$0xff]  }
  0x8e   :  { %1385 = vmatmul.mubr.bf16.vlgmr.msra.gmra.mxu1 %v3043_v8  ;;  %1422 = vmatpush2.bf16.msra.mxu0 %v2565_v9  ;;  %v2662_v9 = vld [vmem:[#allocation8 + $0x14c] ss:$16 sps:$4 sm:$0xff]  }
  0x8f   :  { %1435 = vmatpush1.bf16.msra.mxu1 %v2568_v10  ;;  %1423 = vmatprep.subr.bf16.mxu0 %v2573_v11  ;;  %v2657_v10 = vld [vmem:[#allocation8 + $0x500] ss:$16 sps:$4 sm:$0xff]   ;;  %v2660_v11 = vld [vmem:[#allocation8 + $0x148] ss:$16 sps:$4 sm:$0xff]  }
  0x90   :  { %1436 = vmatprep.subr.bf16.mxu1 %v2576_v12  ;;  %1466 = vmatprep.mubr.bf16.mxu1 %v3054_v37  ;;  %v2667_v12 = vld [vmem:[#allocation8 + $0x12c] ss:$16 sps:$4 sm:$0xff]  }
  0x92   :  { %1424 = vmatpush2.bf16.msra.mxu0 %v2571_v13  ;;  %v2670_v13 = vld [vmem:[#allocation8 + $0x2ec] ss:$16 sps:$4 sm:$0xff]  }
  0x93   :  { %1437 = vmatpush1.bf16.msra.mxu1 %v2574_v14  ;;  %1475 = vmatprep.subr.bf16.mxu0 %v2584_v16  ;;  %v3059_v14 = vcombine.low %v3050_v34, %v3050_v34  ;;  %v2668_v16 = vld [vmem:[#allocation8 + $0x2e8] ss:$16 sps:$4 sm:$0xff]   ;;  %v2700_v34 = vld [vmem:[#allocation8 + $0x48c] ss:$16 sps:$4 sm:$0xff]  }
  0x94   :  { %1438 = vmatprep.subr.bf16.mxu1 %v2581_v15  ;;  %v2665_v15 = vld [vmem:[#allocation8 + $0x128] ss:$16 sps:$4 sm:$0xff]  }
  0x95   :  { %1426 = vmatmul.mubr.bf16.vlgmr.msra.gmra.mxu0 %v3046_v17 }
  0x96   :  { %1476 = vmatpush1.bf16.msra.mxu0 %v2582_v19  ;;  %1507 = vmatprep.mubr.bf16.mxu0 %v3037_v51  ;;  %v2632_v51 = vld [vmem:[#allocation8 + $0x1ec] ss:$16 sps:$4 sm:$0xff]  }
  0x97   :  { %1439 = vmatpush1.bf16.msra.mxu1 %v2579_v18  ;;  %1477 = vmatprep.subr.bf16.mxu0 %v2590_v21  ;;  %v2673_v18 = vld [vmem:[#allocation8 + $0x10c] ss:$16 sps:$4 sm:$0xff]   ;;  %v2674_v21 = vld [vmem:[#allocation8 + $0x2c8] ss:$16 sps:$4 sm:$0xff]  }
  0x98   :  { %1440 = vmatprep.subr.bf16.mxu1 %v2587_v20  ;;  %v2676_v19 = vld [vmem:[#allocation8 + $0x2cc] ss:$16 sps:$4 sm:$0xff]   ;;  %v2671_v20 = vld [vmem:[#allocation8 + $0x108] ss:$16 sps:$4 sm:$0xff]  }
  0x9a   :  { %1478 = vmatpush1.bf16.msra.mxu0 %v2588_v23  ;;  %v2682_v23 = vld [vmem:[#allocation8 + $0x4ec] ss:$16 sps:$4 sm:$0xff]  }
  0x9b   :  { %1441 = vmatpush1.bf16.msra.mxu1 %v2585_v22  ;;  %1479 = vmatprep.subr.bf16.mxu0 %v2596_v25  ;;  %v2679_v22 = vld [vmem:[#allocation8 + $0x2ac] ss:$16 sps:$4 sm:$0xff]   ;;  %v2680_v25 = vld [vmem:[#allocation8 + $0x4e8] ss:$16 sps:$4 sm:$0xff]  }
  0x9c   :  { %1442 = vmatprep.subr.bf16.mxu1 %v2593_v24  ;;  %v2677_v24 = vld [vmem:[#allocation8 + $0x2a8] ss:$16 sps:$4 sm:$0xff]  }
  0x9e   :  { %1480 = vmatpush1.bf16.msra.mxu0 %v2594_v27  ;;  %v2688_v27 = vld [vmem:[#allocation8 + $0x4cc] ss:$16 sps:$4 sm:$0xff]  }
  0x9f   :  { %1443 = vmatpush1.bf16.msra.mxu1 %v2591_v26  ;;  %1481 = vmatprep.subr.bf16.mxu0 %v2602_v29  ;;  %v2685_v26 = vld [vmem:[#allocation8 + $0x28c] ss:$16 sps:$4 sm:$0xff]   ;;  %v2686_v29 = vld [vmem:[#allocation8 + $0x4c8] ss:$16 sps:$4 sm:$0xff]  }
  0xa0   :  { %1444 = vmatprep.subr.bf16.mxu1 %v2599_v28  ;;  %v2683_v28 = vld [vmem:[#allocation8 + $0x288] ss:$16 sps:$4 sm:$0xff]  }
  0xa2   :  { %1482 = vmatpush1.bf16.msra.mxu0 %v2600_v31  ;;  %v2694_v31 = vld [vmem:[#allocation8 + $0x4ac] ss:$16 sps:$4 sm:$0xff]  }
  0xa3   :  { %1445 = vmatpush1.bf16.msra.mxu1 %v2597_v30  ;;  %1483 = vmatprep.subr.bf16.mxu0 %v2608_v33  ;;  %v2691_v30 = vld [vmem:[#allocation8 + $0x26c] ss:$16 sps:$4 sm:$0xff]   ;;  %v2692_v33 = vld [vmem:[#allocation8 + $0x4a8] ss:$16 sps:$4 sm:$0xff]  }
  0xa4   :  { %1446 = vmatprep.subr.bf16.mxu1 %v2605_v32  ;;  %v2689_v32 = vld [vmem:[#allocation8 + $0x268] ss:$16 sps:$4 sm:$0xff]  }
  0xa6   :  { %1484 = vmatpush1.bf16.msra.mxu0 %v2606_v36  ;;  %v2703_v36 = vld [vmem:[#allocation8 + $0x22c] ss:$16 sps:$4 sm:$0xff]  }
  0xa7   :  { %1447 = vmatpush1.bf16.msra.mxu1 %v2603_v35  ;;  %1485 = vmatprep.subr.bf16.mxu0 %v2614_v39  ;;  %v2695_v35 = vld [vmem:[#allocation8 + $0x248] ss:$16 sps:$4 sm:$0xff]  }
  0xa8   :  { %1448 = vmatprep.subr.bf16.mxu1 %v2611_v38  ;;  %v2706_v38 = vld [vmem:[#allocation8 + $0x46c] ss:$16 sps:$4 sm:$0xff]   ;;  %v2701_v39 = vld [vmem:[#allocation8 + $0x228] ss:$16 sps:$4 sm:$0xff]  }
  0xaa   :  { %1486 = vmatpush1.bf16.msra.mxu0 %v2612_v41  ;;  %v2709_v41 = vld [vmem:[#allocation8 + $0x20c] ss:$16 sps:$4 sm:$0xff]  }
  0xab   :  { %1449 = vmatpush1.bf16.msra.mxu1 %v2609_v40  ;;  %1487 = vmatprep.subr.bf16.mxu0 %v2620_v43  ;;  %v2704_v40 = vld [vmem:[#allocation8 + $0x468] ss:$16 sps:$4 sm:$0xff]  }
  0xac   :  { %1450 = vmatprep.subr.bf16.mxu1 %v2617_v42  ;;  %v2712_v42 = vld [vmem:[#allocation8 + $0x44c] ss:$16 sps:$4 sm:$0xff]   ;;  %v2710_v43 = vld [vmem:[#allocation8 + $0x448] ss:$16 sps:$4 sm:$0xff]  }
  0xae   :  { %1488 = vmatpush1.bf16.msra.mxu0 %v2618_v45  ;;  %v2718_v45 = vld [vmem:[#allocation8 + $0x42c] ss:$16 sps:$4 sm:$0xff]  }
  0xaf   :  { %1451 = vmatpush2.bf16.msra.mxu1 %v2615_v44  ;;  %1489 = vmatprep.subr.bf16.mxu0 %v2626_v47  ;;  %v2715_v44 = vld [vmem:[#allocation8 + $0x3ec] ss:$16 sps:$4 sm:$0xff]   ;;  %v2716_v47 = vld [vmem:[#allocation8 + $0x428] ss:$16 sps:$4 sm:$0xff]  }
  0xb0   :  { %1452 = vmatprep.subr.bf16.mxu1 %v2623_v46  ;;  %v2713_v46 = vld [vmem:[#allocation8 + $0x3e8] ss:$16 sps:$4 sm:$0xff]  }
  0xb2   :  { %1490 = vmatpush1.bf16.msra.mxu0 %v2624_v49  ;;  %v2724_v49 = vld [vmem:[#allocation8 + $0x40c] ss:$16 sps:$4 sm:$0xff]  }
  0xb3   :  { %1453 = vmatpush2.bf16.msra.mxu1 %v2621_v48  ;;  %1491 = vmatprep.subr.bf16.mxu0 %v2632_v51  ;;  %v2721_v48 = vld [vmem:[#allocation8 + $0x3cc] ss:$16 sps:$4 sm:$0xff]   ;;  %v2722_v51 = vld [vmem:[#allocation8 + $0x408] ss:$16 sps:$4 sm:$0xff]  }
  0xb4   :  { %1454 = vmatprep.subr.bf16.mxu1 %v2629_v50  ;;  %v2719_v50 = vld [vmem:[#allocation8 + $0x3c8] ss:$16 sps:$4 sm:$0xff]  }
  0xb6   :  { %1492 = vmatpush2.bf16.msra.mxu0 %v2630_v53  ;;  %v2730_v53 = vld [vmem:[#allocation8 + $0x5ec] ss:$16 sps:$4 sm:$0xff]  }
  0xb7   :  { %1455 = vmatpush2.bf16.msra.mxu1 %v2627_v52  ;;  %1493 = vmatprep.subr.bf16.mxu0 %v2638_v55  ;;  %v2727_v52 = vld [vmem:[#allocation8 + $0x3ac] ss:$16 sps:$4 sm:$0xff]   ;;  %v2728_v55 = vld [vmem:[#allocation8 + $0x5e8] ss:$16 sps:$4 sm:$0xff]  }
  0xb8   :  { %1456 = vmatprep.subr.bf16.mxu1 %v2635_v54  ;;  %v2725_v54 = vld [vmem:[#allocation8 + $0x3a8] ss:$16 sps:$4 sm:$0xff]  }
  0xba   :  { %1494 = vmatpush2.bf16.msra.mxu0 %v2636_v57  ;;  %v2736_v57 = vld [vmem:[#allocation8 + $0x5cc] ss:$16 sps:$4 sm:$0xff]  }
  0xbb   :  { %1457 = vmatpush2.bf16.msra.mxu1 %v2633_v56  ;;  %1495 = vmatprep.subr.bf16.mxu0 %v2644_v60  ;;  %v2733_v56 = vld [vmem:[#allocation8 + $0x38c] ss:$16 sps:$4 sm:$0xff]   ;;  %v2734_v60 = vld [vmem:[#allocation8 + $0x5c8] ss:$16 sps:$4 sm:$0xff]  }
  0xbc   :  { %1458 = vmatprep.subr.bf16.mxu1 %v2641_v58  ;;  %v2731_v58 = vld [vmem:[#allocation8 + $0x388] ss:$16 sps:$4 sm:$0xff]  }
  0xbe   :  { %1496 = vmatpush2.bf16.msra.mxu0 %v2642_v62  ;;  %v2742_v62 = vld [vmem:[#allocation8 + $0x5ac] ss:$16 sps:$4 sm:$0xff]  }
  0xbf   :  { %1459 = vmatpush2.bf16.msra.mxu1 %v2639_v61  ;;  %1497 = vmatprep.subr.bf16.mxu0 %v2650_v0  ;;  %v2739_v61 = vld [vmem:[#allocation8 + $0x36c] ss:$16 sps:$4 sm:$0xff]   ;;  %v2740_v0 = vld [vmem:[#allocation8 + $0x5a8] ss:$16 sps:$4 sm:$0xff]  }
  0xc0   :  { %1460 = vmatprep.subr.bf16.mxu1 %v2647_v63  ;;  %v2737_v63 = vld [vmem:[#allocation8 + $0x368] ss:$16 sps:$4 sm:$0xff]  }
  0xc2   :  { %1498 = vmatpush2.bf16.msra.mxu0 %v2648_v2  ;;  %v2748_v2 = vld [vmem:[#allocation8 + $0x58c] ss:$16 sps:$4 sm:$0xff]  }
  0xc3   :  { %1461 = vmatpush2.bf16.msra.mxu1 %v2645_v1  ;;  %1499 = vmatprep.subr.bf16.mxu0 %v2656_v4  ;;  %v2745_v1 = vld [vmem:[#allocation8 + $0x34c] ss:$16 sps:$4 sm:$0xff]   ;;  %v2746_v4 = vld [vmem:[#allocation8 + $0x588] ss:$16 sps:$4 sm:$0xff]  }
  0xc4   :  { %1462 = vmatprep.subr.bf16.mxu1 %v2653_v3  ;;  %v2743_v3 = vld [vmem:[#allocation8 + $0x348] ss:$16 sps:$4 sm:$0xff]  }
  0xc6   :  { %1500 = vmatpush2.bf16.msra.mxu0 %v2654_v6  ;;  %v2754_v6 = vld [vmem:[#allocation8 + $0x56c] ss:$16 sps:$4 sm:$0xff]  }
  0xc7   :  { %1463 = vmatpush2.bf16.msra.mxu1 %v2651_v5  ;;  %1501 = vmatprep.subr.bf16.mxu0 %v2662_v9  ;;  %v2751_v5 = vld [vmem:[#allocation8 + $0x32c] ss:$16 sps:$4 sm:$0xff]   ;;  %v2752_v9 = vld [vmem:[#allocation8 + $0x568] ss:$16 sps:$4 sm:$0xff]  }
  0xc8   :  { %1464 = vmatprep.subr.bf16.mxu1 %v2659_v7  ;;  %v2749_v7 = vld [vmem:[#allocation8 + $0x328] ss:$16 sps:$4 sm:$0xff]  }
  0xca   :  { %1502 = vmatpush2.bf16.msra.mxu0 %v2660_v11  ;;  %v2760_v11 = vld [vmem:[#allocation8 + $0x54c] ss:$16 sps:$4 sm:$0xff]  }
  0xcb   :  { %1465 = vmatpush2.bf16.msra.mxu1 %v2657_v10  ;;  %1503 = vmatprep.subr.bf16.mxu0 %v2667_v12  ;;  %v2757_v10 = vld [vmem:[#allocation8 + $0x30c] ss:$16 sps:$4 sm:$0xff]   ;;  %v2755_v12 = vld [vmem:[#allocation8 + $0x308] ss:$16 sps:$4 sm:$0xff]  }
  0xcc   :  { %1516 = vmatprep.subr.bf16.mxu1 %v2670_v13  ;;  %v2758_v13 = vld [vmem:[#allocation8 + $0x548] ss:$16 sps:$4 sm:$0xff]  }
  0xce   :  { %1467 = vmatmul.mubr.bf16.vlgmr.msra.gmra.mxu1 %v3059_v14  ;;  %1504 = vmatpush2.bf16.msra.mxu0 %v2665_v15  ;;  %v2763_v15 = vld [vmem:[#allocation8 + $0x52c] ss:$16 sps:$4 sm:$0xff]  }
  0xcf   :  { %1517 = vmatpush1.bf16.msra.mxu1 %v2668_v16  ;;  %1505 = vmatprep.subr.bf16.mxu0 %v2673_v18  ;;  %v2767_v16 = vld [vmem:[#allocation11 + $0x78] sm:$0xff]  }
  0xd0   :  { %1518 = vmatprep.subr.bf16.mxu1 %v2676_v19  ;;  %1548 = vmatprep.mubr.bf16.mxu1 %v3040_v59  ;;  %v2697_v59 = vld [vmem:[#allocation8 + $0x24c] ss:$16 sps:$4 sm:$0xff]   ;;  %v2761_v18 = vld [vmem:[#allocation8 + $0x528] ss:$16 sps:$4 sm:$0xff]  }
  0xd1   :  { %v2768_v19 = vld [vmem:[#allocation11 + $0x38] sm:$0xff]  }
  0xd2   :  { %1506 = vmatpush2.bf16.msra.mxu0 %v2671_v20  ;;  %v2766_v20 = vld [vmem:[#allocation8 + $0x50c] ss:$16 sps:$4 sm:$0xff]  }
  0xd3   :  { %1519 = vmatpush1.bf16.msra.mxu1 %v2674_v21  ;;  %1557 = vmatprep.subr.bf16.mxu0 %v2682_v23  ;;  %v2769_v21 = vld [vmem:[#allocation11 + $0x70] sm:$0xff]  }
  0xd4   :  { %1520 = vmatprep.subr.bf16.mxu1 %v2679_v22  ;;  %v2764_v22 = vld [vmem:[#allocation8 + $0x508] ss:$16 sps:$4 sm:$0xff]   ;;  %v2770_v23 = vld [vmem:[#allocation11 + $0x30] sm:$0xff]  }
  0xd5   :  { %1508 = vmatmul.mubr.bf16.vlgmr.msra.gmra.mxu0 %v3043_v8  ;;  %v2698_v8 = vld [vmem:[#allocation8 + $0x488] ss:$16 sps:$4 sm:$0xff]  }
  0xd6   :  { %1558 = vmatpush1.bf16.msra.mxu0 %v2680_v25  ;;  %1589 = vmatprep.mubr.bf16.mxu0 %v3054_v37  ;;  %v2707_v37 = vld [vmem:[#allocation8 + $0x208] ss:$16 sps:$4 sm:$0xff]  }
  0xd7   :  { %1521 = vmatpush1.bf16.msra.mxu1 %v2677_v24  ;;  %1559 = vmatprep.subr.bf16.mxu0 %v2688_v27  ;;  %v2771_v24 = vld [vmem:[#allocation11 + $0x68] sm:$0xff]  }
  0xd8   :  { %1522 = vmatprep.subr.bf16.mxu1 %v2685_v26  ;;  %v2772_v25 = vld [vmem:[#allocation11 + $0x28] sm:$0xff]   ;;  %v2773_v26 = vld [vmem:[#allocation11 + $0x60] sm:$0xff]  }
  0xda   :  { %1560 = vmatpush1.bf16.msra.mxu0 %v2686_v29 }
  0xdb   :  { %1523 = vmatpush1.bf16.msra.mxu1 %v2683_v28  ;;  %1561 = vmatprep.subr.bf16.mxu0 %v2694_v31  ;;  %v2774_v28 = vld [vmem:[#allocation11 + $0x20] sm:$0xff]   ;;  %v2776_v31 = vld [vmem:[#allocation11 + $0x18] sm:$0xff]  }
  0xdc   :  { %1524 = vmatprep.subr.bf16.mxu1 %v2691_v30 }
  0xde   :  { %1562 = vmatpush1.bf16.msra.mxu0 %v2692_v33  ;;  %v2777_v33 = vld [vmem:[#allocation11 + $0x50] sm:$0xff]  }
  0xdf   :  { %1525 = vmatpush1.bf16.msra.mxu1 %v2689_v32  ;;  %1563 = vmatprep.subr.bf16.mxu0 %v2700_v34  ;;  %v2779_v34 = vld [vmem:[#allocation11 + $0x48] sm:$0xff]  }
  0xe0   :  { %1526 = vmatprep.subr.bf16.mxu1 %v2697_v59  ;;  %v2778_v59 = vld [vmem:[#allocation11 + $0x10] sm:$0xff]  }
  0xe2   :  { %1564 = vmatpush1.bf16.msra.mxu0 %v2698_v8  ;;  %v2782_v8 = vld [vmem:[#allocation11] sm:$0xff]  }
  0xe3   :  { %1527 = vmatpush1.bf16.msra.mxu1 %v2695_v35  ;;  %1565 = vmatprep.subr.bf16.mxu0 %v2706_v38  ;;  %v2780_v35 = vld [vmem:[#allocation11 + $0x8] sm:$0xff]   ;;  %v2799_v38 = vld [vmem:[#allocation11 + $0xf8] sm:$0xff]  }
  0xe4   :  { %1528 = vmatprep.subr.bf16.mxu1 %v2703_v36  ;;  %v2783_v36 = vld [vmem:[#allocation10 + $0x78] sm:$0xff]  }
  0xe6   :  { %1566 = vmatpush1.bf16.msra.mxu0 %v2704_v40  ;;  %v2801_v40 = vld [vmem:[#allocation11 + $0xf0] sm:$0xff]  }
  0xe7   :  { %1529 = vmatpush1.bf16.msra.mxu1 %v2701_v39  ;;  %1567 = vmatprep.subr.bf16.mxu0 %v2712_v42  ;;  %v2800_v39 = vld [vmem:[#allocation11 + $0xb8] sm:$0xff]   ;;  %v2803_v42 = vld [vmem:[#allocation11 + $0xe8] sm:$0xff]  }
  0xe8   :  { %1530 = vmatprep.subr.bf16.mxu1 %v2709_v41  ;;  %v2802_v41 = vld [vmem:[#allocation11 + $0xb0] sm:$0xff]  }
  0xea   :  { %1568 = vmatpush1.bf16.msra.mxu0 %v2710_v43  ;;  %v2805_v43 = vld [vmem:[#allocation11 + $0xe0] sm:$0xff]  }
  0xeb   :  { %1531 = vmatpush1.bf16.msra.mxu1 %v2707_v37  ;;  %1569 = vmatprep.subr.bf16.mxu0 %v2718_v45  ;;  %v2804_v37 = vld [vmem:[#allocation11 + $0xa8] sm:$0xff]   ;;  %v2807_v45 = vld [vmem:[#allocation11 + $0xd8] sm:$0xff]  }
  0xec   :  { %1532 = vmatprep.subr.bf16.mxu1 %v2715_v44  ;;  %v2806_v44 = vld [vmem:[#allocation11 + $0xa0] sm:$0xff]  }
  0xee   :  { %1570 = vmatpush1.bf16.msra.mxu0 %v2716_v47  ;;  %v2808_v47 = vld [vmem:[#allocation11 + $0x98] sm:$0xff]  }
  0xef   :  { %1533 = vmatpush2.bf16.msra.mxu1 %v2713_v46  ;;  %1571 = vmatprep.subr.bf16.mxu0 %v2724_v49  ;;  %v2809_v49 = vld [vmem:[#allocation11 + $0xd0] sm:$0xff]  }
  0xf0   :  { %1534 = vmatprep.subr.bf16.mxu1 %v2721_v48 }
  0xf2   :  { %1572 = vmatpush1.bf16.msra.mxu0 %v2722_v51  ;;  %v2810_v51 = vld [vmem:[#allocation11 + $0x90] sm:$0xff]  }
  0xf3   :  { %1535 = vmatpush2.bf16.msra.mxu1 %v2719_v50  ;;  %1573 = vmatprep.subr.bf16.mxu0 %v2730_v53  ;;  %v2811_v53 = vld [vmem:[#allocation11 + $0xc8] sm:$0xff]  }
  0xf4   :  { %1536 = vmatprep.subr.bf16.mxu1 %v2727_v52 }
  0xf6   :  { %1574 = vmatpush2.bf16.msra.mxu0 %v2728_v55  ;;  %v2812_v55 = vld [vmem:[#allocation11 + $0x88] sm:$0xff]  }
  0xf7   :  { %1537 = vmatpush2.bf16.msra.mxu1 %v2725_v54  ;;  %1575 = vmatprep.subr.bf16.mxu0 %v2736_v57  ;;  %v2813_v57 = vld [vmem:[#allocation11 + $0xc0] sm:$0xff]  }
  0xf8   :  { %1538 = vmatprep.subr.bf16.mxu1 %v2733_v56 }
  0xfa   :  { %1576 = vmatpush2.bf16.msra.mxu0 %v2734_v60  ;;  %v2814_v60 = vld [vmem:[#allocation11 + $0x80] sm:$0xff]  }
  0xfb   :  { %1539 = vmatpush2.bf16.msra.mxu1 %v2731_v58  ;;  %1577 = vmatprep.subr.bf16.mxu0 %v2742_v62 }
  0xfc   :  { %1540 = vmatprep.subr.bf16.mxu1 %v2739_v61 }
  0xfe   :  { %1578 = vmatpush2.bf16.msra.mxu0 %v2740_v0 }
  0xff   :  { %1541 = vmatpush2.bf16.msra.mxu1 %v2737_v63  ;;  %1579 = vmatprep.subr.bf16.mxu0 %v2748_v2 }
 0x100   :  { %1542 = vmatprep.subr.bf16.mxu1 %v2745_v1 }
 0x102   :  { %1580 = vmatpush2.bf16.msra.mxu0 %v2746_v4 }
 0x103   :  { %1543 = vmatpush2.bf16.msra.mxu1 %v2743_v3  ;;  %1581 = vmatprep.subr.bf16.mxu0 %v2754_v6  ;;  %v2784_v6 = vld [vmem:[#allocation10 + $0x38] sm:$0xff]  }
 0x104   :  { %1544 = vmatprep.subr.bf16.mxu1 %v2751_v5 }
 0x106   :  { %1582 = vmatpush2.bf16.msra.mxu0 %v2752_v9 }
 0x107   :  { %1545 = vmatpush2.bf16.msra.mxu1 %v2749_v7  ;;  %1583 = vmatprep.subr.bf16.mxu0 %v2760_v11 }
 0x108   :  { %1546 = vmatprep.subr.bf16.mxu1 %v2757_v10  ;;  %v2785_v10 = vld [vmem:[#allocation10 + $0x70] sm:$0xff]  }
 0x10a   :  { %1584 = vmatpush2.bf16.msra.mxu0 %v2758_v13  ;;  %v2786_v13 = vld [vmem:[#allocation10 + $0x30] sm:$0xff]  }
 0x10b   :  { %1547 = vmatpush2.bf16.msra.mxu1 %v2755_v12  ;;  %1585 = vmatprep.subr.bf16.mxu0 %v2763_v15 }
 0x10c   :  { %2387 = vmatprep.subr.bf16.mxu1 %v2767_v16  ;;  %v2787_v16 = vld [vmem:[#allocation10 + $0x68] sm:$0xff]  }
 0x10e   :  { %1549 = vmatmul.mubr.bf16.vlgmr.msra.gmra.mxu1 %v3046_v17  ;;  %1586 = vmatpush2.bf16.msra.mxu0 %v2761_v18  ;;  %v2775_v17 = vld [vmem:[#allocation11 + $0x58] sm:$0xff]  }
 0x10f   :  { %2388 = vmatpush3.bf16.msra.mxu1 %v2768_v19  ;;  %1587 = vmatprep.subr.bf16.mxu0 %v2766_v20  ;;  %v2788_v19 = vld [vmem:[#allocation10 + $0x28] sm:$0xff]  }
 0x110   :  { %2389 = vmatprep.subr.bf16.mxu1 %v2769_v21  ;;  %v2789_v21 = vld [vmem:[#allocation10 + $0x60] sm:$0xff]  }
 0x112   :  { %1588 = vmatpush2.bf16.msra.mxu0 %v2764_v22  ;;  %v2790_v22 = vld [vmem:[#allocation10 + $0x20] sm:$0xff]  }
 0x113   :  { %2390 = vmatpush3.bf16.msra.mxu1 %v2770_v23  ;;  %2409 = vmatprep.subr.bf16.mxu0 %v2799_v38  ;;  %v2791_v23 = vld [vmem:[#allocation10 + $0x58] sm:$0xff]  }
 0x114   :  { %2391 = vmatprep.subr.bf16.mxu1 %v2771_v24  ;;  %v2792_v24 = vld [vmem:[#allocation10 + $0x18] sm:$0xff]  }
 0x115   :  { %v3066_v27 = vpop.f32.mrf.mxu0  ;;  %1590 = vmatmul.mubr.bf16.vlgmr.msra.gmra.mxu0 %v3059_v14  ;;  %v2781_v14 = vld [vmem:[#allocation11 + $0x40] sm:$0xff]  }
 0x116   :  { %2410 = vmatpush3.bf16.msra.mxu0 %v2800_v39 }
 0x117   :  { %2392 = vmatpush3.bf16.msra.mxu1 %v2772_v25  ;;  %v3069_v29 = vpop.f32.mrf.mxu0  ;;  %2411 = vmatprep.subr.bf16.mxu0 %v2801_v40  ;;  %v2793_v25 = vld [vmem:[#allocation10 + $0x50] sm:$0xff]  }
 0x118   :  { %2393 = vmatprep.subr.bf16.mxu1 %v2773_v26  ;;  %v1599_v11 = vpack.c.bf16 %v3069_v29, %v3069_v29  ;;  %v2794_v26 = vld [vmem:[#allocation10 + $0x10] sm:$0xff]   ;;  %v2796_v29 = vld [vmem:[#allocation10 + $0x8] sm:$0xff]  }
 0x119   :  { %v173_v30 = vpop.f32.mrf.mxu0 }
 0x11a   :  { %2412 = vmatpush3.bf16.msra.mxu0 %v2802_v41  ;;  %v2798_v30 = vld [vmem:[#allocation10] sm:$0xff]  }
 0x11b   :  { %2394 = vmatpush3.bf16.msra.mxu1 %v2774_v28  ;;  %v174_v32 = vpop.f32.mrf.mxu0  ;;  %2413 = vmatprep.subr.bf16.mxu0 %v2803_v42  ;;  %v2795_v28 = vld [vmem:[#allocation10 + $0x48] sm:$0xff]  }
 0x11c   :  { %2395 = vmatprep.subr.bf16.mxu1 %v2775_v17  ;;  %v2797_v17 = vld [vmem:[#allocation10 + $0x40] sm:$0xff]  }
 0x11e   :  { %2414 = vmatpush3.bf16.msra.mxu0 %v2804_v37 }
 0x11f   :  { %2396 = vmatpush3.bf16.msra.mxu1 %v2776_v31  ;;  %2415 = vmatprep.subr.bf16.mxu0 %v2805_v43  ;;  %v1598_v31 = vpack.c.bf16 %v3066_v27, %v3066_v27 }
 0x120   :  { %2397 = vmatprep.subr.bf16.mxu1 %v2777_v33 }
 0x122   :  { %2416 = vmatpush3.bf16.msra.mxu0 %v2806_v44 }
 0x123   :  { %2398 = vmatpush3.bf16.msra.mxu1 %v2778_v59  ;;  %2417 = vmatprep.subr.bf16.mxu0 %v2807_v45 }
 0x124   :  { %2399 = vmatprep.subr.bf16.mxu1 %v2779_v34 }
 0x126   :  { %2418 = vmatpush3.bf16.msra.mxu0 %v2808_v47 }
 0x127   :  { %2400 = vmatpush3.bf16.msra.mxu1 %v2780_v35  ;;  %2419 = vmatprep.subr.bf16.mxu0 %v2809_v49 }
 0x128   :  { %2401 = vmatprep.subr.bf16.mxu1 %v2781_v14 }
 0x12a   :  { %2420 = vmatpush3.bf16.msra.mxu0 %v2810_v51 }
 0x12b   :  { %2402 = vmatpush3.bf16.msra.mxu1 %v2782_v8  ;;  %2421 = vmatprep.subr.bf16.mxu0 %v2811_v53 }
 0x12c   :  { %2431 = vmatprep.subr.bf16.mxu1 %v2783_v36 }
 0x12e   :  { %2422 = vmatpush3.bf16.msra.mxu0 %v2812_v55 }
 0x12f   :  { %2423 = vmatprep.subr.bf16.mxu0 %v2813_v57 }
 0x132   :  { %2424 = vmatpush3.bf16.msra.mxu0 %v2814_v60 }
 0x14e   :  { %v1386_v46 = vpop.f32.mrf.mxu1 }
 0x150   :  { %v1388_v48 = vpop.f32.mrf.mxu1 }
 0x152   :  { %v1390_v50 = vpop.f32.mrf.mxu1 }
 0x154   :  { %v1391_v52 = vpop.f32.mrf.mxu1 }
 0x155   :  { %v1427_v54 = vpop.f32.mrf.mxu0 }
 0x156   :  { %v1428_v62 = vadd.f32 %v1427_v54, %v1386_v46 }
 0x157   :  { %v1429_v56 = vpop.f32.mrf.mxu0 }
 0x158   :  { %v1430_v0 = vadd.f32 %v1429_v56, %v1388_v48 }
 0x159   :  { %v1431_v58 = vpop.f32.mrf.mxu0 }
 0x15a   :  { %v2386_v58 = vld [vmem:[%s3087_s6] ss:$0 sm:$0xff] }
 0x15b   :  { %v1432_v61 = vpop.f32.mrf.mxu0 }
 0x18e   :  { %v1468_v63 = vpop.f32.mrf.mxu1 }
 0x18f   :  { %v1469_v1 = vadd.f32 %v1468_v63, %v1428_v62 }
 0x190   :  { %v1470_v2 = vpop.f32.mrf.mxu1 }
 0x191   :  { %v1471_v3 = vadd.f32 %v1470_v2, %v1430_v0  ;;  %v1632_v7 = vpack.c.bf16 %v1469_v1, %v1469_v1 }
 0x192   :  { %v1472_v4 = vpop.f32.mrf.mxu1 }
 0x193   :  { %v1633_v5 = vpack.c.bf16 %v1471_v3, %v1471_v3 }
 0x194   :  { %v1473_v9 = vpop.f32.mrf.mxu1 }
 0x195   :  { %1924 = vmatprep.mubr.bf16.mxu1 %v1633_v5  ;;  %v1509_v12 = vpop.f32.mrf.mxu0 }
 0x196   :  { %1925 = vmatmul.mubr.bf16.vlgmr.msra.gmra.mxu1 %v1632_v7 }
 0x197   :  { %2432 = vmatpush3.bf16.msra.mxu1 %v2784_v6  ;;  %2100 = vmatprep.mubr.bf16.mxu1 %v1599_v11  ;;  %v1511_v15 = vpop.f32.mrf.mxu0 }
 0x198   :  { %2433 = vmatprep.subr.bf16.mxu1 %v2785_v10 }
 0x199   :  { %v1513_v18 = vpop.f32.mrf.mxu0 }
 0x19b   :  { %2434 = vmatpush3.bf16.msra.mxu1 %v2786_v13  ;;  %v1514_v20 = vpop.f32.mrf.mxu0 }
 0x19c   :  { %2435 = vmatprep.subr.bf16.mxu1 %v2787_v16 }
 0x19f   :  { %2436 = vmatpush3.bf16.msra.mxu1 %v2788_v19 }
 0x1a0   :  { %2437 = vmatprep.subr.bf16.mxu1 %v2789_v21 }
 0x1a3   :  { %2438 = vmatpush3.bf16.msra.mxu1 %v2790_v22 }
 0x1a4   :  { %2439 = vmatprep.subr.bf16.mxu1 %v2791_v23 }
 0x1a7   :  { %2440 = vmatpush3.bf16.msra.mxu1 %v2792_v24 }
 0x1a8   :  { %2441 = vmatprep.subr.bf16.mxu1 %v2793_v25 }
 0x1ab   :  { %2442 = vmatpush3.bf16.msra.mxu1 %v2794_v26 }
 0x1ac   :  { %2443 = vmatprep.subr.bf16.mxu1 %v2795_v28 }
 0x1af   :  { %2444 = vmatpush3.bf16.msra.mxu1 %v2796_v29 }
 0x1b0   :  { %2445 = vmatprep.subr.bf16.mxu1 %v2797_v17 }
 0x1b3   :  { %2446 = vmatpush3.bf16.msra.mxu1 %v2798_v30 }
 0x1b6   :  { %2101 = vmatmul.mubr.bf16.vlgmr.msra.gmra.mxu1 %v1598_v31 }
 0x1ce   :  { %v1550_v32 = vpop.f32.mrf.mxu1 }
 0x1cf   :  { %v1551_v35 = vadd.f32 %v1550_v32, %v1509_v12 }
 0x1d0   :  { %v1552_v33 = vpop.f32.mrf.mxu1 }
 0x1d1   :  { %v1553_v8 = vadd.f32 %v1552_v33, %v1511_v15 }
 0x1d2   :  { %v1554_v59 = vpop.f32.mrf.mxu1 }
 0x1d4   :  { %v1555_v34 = vpop.f32.mrf.mxu1 }
 0x1d5   :  { %v1591_v14 = vpop.f32.mrf.mxu0 }
 0x1d6   :  { %v1592_v36 = vadd.f32 %v1591_v14, %v1551_v35 }
 0x1d7   :  { %v1593_v38 = vpop.f32.mrf.mxu0 }
 0x1d8   :  { %v1594_v39 = vadd.f32 %v1593_v38, %v1553_v8  ;;  %v1634_v42 = vpack.c.bf16 %v1592_v36, %v1592_v36 }
 0x1d9   :  { %v1595_v40 = vpop.f32.mrf.mxu0 }
 0x1da   :  { %v1635_v41 = vpack.c.bf16 %v1594_v39, %v1594_v39 }
 0x1db   :  { %v1596_v37 = vpop.f32.mrf.mxu0 }
 0x1dc   :  { %1964 = vmatprep.mubr.bf16.mxu0 %v1635_v41 }
 0x1dd   :  { %1965 = vmatmul.mubr.bf16.vlgmr.msra.gmra.mxu0 %v1634_v42 }
 0x256   :  { %v2403_v43 = vpop.f32.mrf.mxu1 }
 0x258   :  { %v2404_v44 = vpop.f32.mrf.mxu1 }
 0x259   :  { %v2405_v27 = vadd.f32 %v2404_v44, %v2403_v43 }
 0x25a   :  { %v2406_v45 = vpop.f32.mrf.mxu1 }
 0x25c   :  { %v2407_v46 = vpop.f32.mrf.mxu1 }
 0x276   :  { %v2447_v47 = vpop.f32.mrf.mxu1 }
 0x278   :  { %v2448_v48 = vpop.f32.mrf.mxu1 }
 0x279   :  { %v2449_v55 = vadd.f32 %v2448_v48, %v2447_v47 }
 0x27a   :  { %v2450_v49 = vpop.f32.mrf.mxu1 }
 0x27c   :  { %v2451_v50 = vpop.f32.mrf.mxu1 }
 0x29d   :  { %v2425_v51 = vpop.f32.mrf.mxu0 }
 0x29f   :  { %v2426_v52 = vpop.f32.mrf.mxu0 }
 0x2a0   :  { %v2427_v53 = vadd.f32 %v2426_v52, %v2425_v51 }
 0x2a1   :  { %v2428_v54 = vpop.f32.mrf.mxu0 }
 0x2a2   :  { %v1967_v56 = vadd.f32 %v2427_v53, %v2405_v27 }
 0x2a3   :  { %v2429_v57 = vpop.f32.mrf.mxu0 }
 0x2a4   :  { %v2103_v60 = vadd.f32 %v2449_v55, %v1967_v56 }
 0x2a6   :  { %v2115_v61 = vadd.f32 %v2386_v58, %v2103_v60 }
 0x2a8   :  { %2116 = vst [vmem:[#allocation13] sm:$0xff] %v2115_v61 }
 0x2a9   :  { %2946 = shalt.err (!%p2943_p6)
}
 0x2aa   :  { %2126 = dma.vmem_to_hbm [thread:$0]  %s2124_s11, 128, %s3088_s7, [#allocation4]  }
 0x2ab   :  { %2963 = dma.done.wait [#allocation4], 128  }
 0x2ac   :  { %2964 = vsyncadd [#allocation4], 4294967168 }
 0x2ad   :  { %2130 = vsyncpa [#allocation3], 1 }
 0x2ae   :  { %2131 = vsyncpa [#allocation6], 1 }
 0x2af   :  { %2132 = vsyncpa [#allocation9], 1 }
 0x2b0   :  { %2133 = vsyncpa [#allocation12], 1 }
 0x2b1   :  { %2134 = vsyncpa [#allocation4], 1 }

</bundles_post_ra>
